<compile_context>
chip_gen: v7x
topology: tpu7x:2x2x1
jax: 0.10.0
libtpu: 0.0.40
codegen_flags: <defaults>
</compile_context>

<pallas_src>
import numpy as np
import jax
import jax.numpy as jnp
from jax import lax
from jax.experimental import pallas as pl
from jax.experimental.pallas import tpu as pltpu


def select_deepsupervision_layers(s):
    return list(s[0:-2]) + [s[-2]]


def _linear_resize_matrix(in_size: int, out_size: int) -> np.ndarray:
    """1-D linear interpolation matrix, half-pixel centers (align_corners=False).

    Rows sum to 1 (in f32), which lets the per-branch conv bias be hoisted out of the
    kernel hot loop and added once per output channel after resizing."""
    R = np.zeros((out_size, in_size), dtype=np.float32)
    scale = in_size / out_size
    for t in range(out_size):
        src = max((t + 0.5) * scale - 0.5, 0.0)
        i0 = min(int(np.floor(src)), in_size - 1)
        i1 = min(i0 + 1, in_size - 1)
        w1 = src - i0
        R[t, i0] += 1.0 - w1
        R[t, i1] += w1
    return R


def _make_kernel(branch_meta, c_out, total_ck):
    """branch_meta: list of (c_k, h_k, col_offset) into the packed 1-D SMEM table."""
    stride = total_ck + 1

    def kernel(wb_ref, *refs):
        out_ref = refs[-1]                       # (1, c_out, h_t, w_t) f32

        # ---- Phase 1: batched W-resize, one MXU matmul per branch (bf16 in, f32 out,
        #      lane-dense in w_t).  The activation is read exactly once per branch. --
        z_planes = []
        for k, (c_k, h_k, off) in enumerate(branch_meta):
            x_ref, _, rw_ref = refs[3 * k: 3 * k + 3]
            z = jnp.dot(x_ref[0], rw_ref[...],                 # (c_k*h_k, w_k)@(w_k, w_t)
                        preferred_element_type=jnp.float32)
            z_planes.append(z)                                 # (c_k*h_k, w_t) f32

        # ---- Phase 2: per output channel -> contract input channels (VPU, f32,
        #      lane-dense planes), H-resize (MXU), accumulate across branches in an
        #      f32 temp and write the output plane exactly once. --------------------
        for c in range(c_out):
            acc = None
            for k, (c_k, h_k, off) in enumerate(branch_meta):
                rh_ref = refs[3 * k + 1]                       # (h_t, h_k) bf16
                z = z_planes[k]
                row = c * stride + off
                s = wb_ref[row] * z[0:h_k, :]
                for ci in range(1, c_k):
                    s = s + wb_ref[row + ci] * z[ci * h_k:(ci + 1) * h_k, :]
                o = jnp.dot(rh_ref[...], s.astype(jnp.bfloat16),
                            preferred_element_type=jnp.float32)  # (h_t, w_t)
                acc = o if acc is None else acc + o
            # hoisted, branch-summed bias (resize rows sum to 1)
            out_ref[0, c] = acc + wb_ref[c * stride + total_ck]

    return kernel


def _vmem_limit_bytes(vmem_est: int) -> int:
    try:
        cap = int(pltpu.get_tpu_info().vmem_capacity_bytes)
    except Exception:
        cap = 64 * 1024 * 1024          # assume the smallest (v7x per-TC VMEM)
    headroom = 16 * 1024 * 1024         # Mosaic scratch, MXU staging, spill slack
    hard_cap = max(cap - headroom, 32 * 1024 * 1024)
    return int(min(max(4 * vmem_est, 16 * 1024 * 1024), hard_cap))


def deep_supervision_forward(intermediates, head_weights, head_biases):
    """Pallas version of DeepSupervisionComposite.forward, given the backbone's
    intermediates (NCHW) and the 1x1-conv head parameters."""
    target = intermediates[-1]
    N, c_out, h_t, w_t = (int(d) for d in target.shape)
    seq = select_deepsupervision_layers(intermediates)
    assert len(seq) == len(head_weights) == len(head_biases)

    # ---- pack all head weights + branch-summed bias into ONE flat SMEM table ----
    cks = [int(o.shape[1]) for o in seq]
    total_ck = int(np.sum(cks))
    stride = total_ck + 1
    wb = np.zeros((c_out, stride), dtype=np.float32)
    branch_meta = []
    off = 0
    for o, w, b in zip(seq, head_weights, head_biases):
        c_k, h_k = int(o.shape[1]), int(o.shape[2])
        wb[:, off:off + c_k] = np.asarray(w, dtype=np.float32)
        wb[:, total_ck] += np.asarray(b, dtype=np.float32)     # hoisted, summed bias
        branch_meta.append((c_k, h_k, off))
        off += c_k
    wb_flat = jnp.asarray(wb.reshape(-1))                      # 1-D SMEM table

    flat_inputs = [wb_flat]
    in_specs = [pl.BlockSpec(memory_space=pltpu.MemorySpace.SMEM)]
    vmem_est = 2 * c_out * h_t * w_t * 4                       # out block f32, 2 bufs
    for o in seq:
        n, c_k, h_k, w_k = (int(d) for d in o.shape)
        assert n == N
        # leading-dim collapse in the wrapper (layout-free): pad (8,128) once/branch
        x3 = o.reshape(n, c_k * h_k, w_k).astype(jnp.bfloat16)
        rh = jnp.asarray(_linear_resize_matrix(h_k, h_t), dtype=jnp.bfloat16)   # (h_t,h_k)
        rwT = jnp.asarray(_linear_resize_matrix(w_k, w_t).T, dtype=jnp.bfloat16)  # (w_k,w_t)
        flat_inputs += [x3, rh, rwT]
        in_specs += [
            pl.BlockSpec((1, c_k * h_k, w_k), lambda i: (i, 0, 0)),
            pl.BlockSpec((h_t, h_k), lambda i: (0, 0)),
            pl.BlockSpec((w_k, w_t), lambda i: (0, 0)),
        ]
        vmem_est += 2 * c_k * h_k * w_k * 2                    # x block bf16, 2 bufs
        vmem_est += 2 * (h_t * h_k + w_k * w_t) * 2            # constants bf16
        vmem_est += c_k * h_k * w_t * 4                        # resident Z temp (f32)
    vmem_est += (c_out + 1) * h_t * w_t * 4                    # per-channel acc temps

    out_spec = pl.BlockSpec((1, c_out, h_t, w_t), lambda i: (i, 0, 0, 0))
    fn = pl.pallas_call(
        _make_kernel(branch_meta, c_out, total_ck),
        out_shape=jax.ShapeDtypeStruct((N, c_out, h_t, w_t), jnp.float32),
        grid_spec=pltpu.PrefetchScalarGridSpec(
            num_scalar_prefetch=0,
            grid=(N,),
            in_specs=in_specs,
            out_specs=out_spec,
        ),
        compiler_params=pltpu.CompilerParams(
            dimension_semantics=("parallel",),
            vmem_limit_bytes=_vmem_limit_bytes(vmem_est),
        ),
    )
    return fn(*flat_inputs)


# ---------------- synthetic backbone (plain JAX glue) ----------------

def _conv2d(x, w, b, stride=1):
    y = lax.conv_general_dilated(
        x, w, window_strides=(stride, stride), padding="SAME",
        dimension_numbers=("NCHW", "OIHW", "NCHW"))
    return y + b[None, :, None, None]


def _upsample2x_nearest(x):
    return jnp.repeat(jnp.repeat(x, 2, axis=2), 2, axis=3)


def backbone_forward_with_intermediate(params, x):
    e1 = jax.nn.relu(_conv2d(x, params["e1_w"], params["e1_b"], stride=2))   # (N,4,H/2,W/2)
    e2 = jax.nn.relu(_conv2d(e1, params["e2_w"], params["e2_b"], stride=2))  # (N,8,H/4,W/4)
    d1 = jax.nn.relu(_conv2d(_upsample2x_nearest(e2),
                             params["d1_w"], params["d1_b"]))                # (N,4,H/2,W/2)
    d0 = _conv2d(_upsample2x_nearest(d1), params["d0_w"], params["d0_b"])    # (N,2,H,W)
    return [e2, d1, d0]


# ---------------- pure-JAX reference for verification ----------------

def reference_forward(intermediates, head_ws, head_bs):
    target = intermediates[-1]
    h_t, w_t = target.shape[2:]
    seq = select_deepsupervision_layers(intermediates)
    out = 0.0
    for o, w, b in zip(seq, head_ws, head_bs):
        _, c_k, h_k, w_k = o.shape
        y = jnp.einsum("oc,nchw->nohw", w, o) + b[None, :, None, None]
        rw = jnp.asarray(_linear_resize_matrix(w_k, w_t))
        rh = jnp.asarray(_linear_resize_matrix(h_k, h_t))
        y = jnp.einsum("nohw,sw->nohs", y, rw)
        y = jnp.einsum("th,nohs->nots", rh, y)
        out = out + y
    return out


if __name__ == "__main__":
    key = jax.random.PRNGKey(0)
    ks = jax.random.split(key, 10)
    N, C_in, H, W = 2, 3, 16, 16
    x = jax.random.normal(ks[0], (N, C_in, H, W), jnp.float32)

    params = {
        "e1_w": 0.1 * jax.random.normal(ks[1], (4, 3, 3, 3), jnp.float32),
        "e1_b": 0.01 * jax.random.normal(ks[2], (4,), jnp.float32),
        "e2_w": 0.1 * jax.random.normal(ks[3], (8, 4, 3, 3), jnp.float32),
        "e2_b": 0.01 * jax.random.normal(ks[4], (8,), jnp.float32),
        "d1_w": 0.1 * jax.random.normal(ks[5], (4, 8, 3, 3), jnp.float32),
        "d1_b": 0.01 * jax.random.normal(ks[6], (4,), jnp.float32),
        "d0_w": 0.1 * jax.random.normal(ks[7], (2, 4, 3, 3), jnp.float32),
        "d0_b": 0.01 * jax.random.normal(ks[8], (2,), jnp.float32),
    }

    intermediates = backbone_forward_with_intermediate(params, x)
    c_out = intermediates[-1].shape[1]             # output_channels = outputs[-1].shape[1]
    selected = select_deepsupervision_layers(intermediates)

    # deep-supervision heads: 1x1 conv (bias, norm=None, activation=None) per selected layer
    head_ws, head_bs = [], []
    hk = jax.random.split(ks[9], 2 * len(selected))
    for i, o in enumerate(selected):
        c_k = o.shape[1]
        head_ws.append(0.1 * jax.random.normal(hk[2 * i], (c_out, c_k), jnp.float32))
        head_bs.append(0.01 * jax.random.normal(hk[2 * i + 1], (c_out,), jnp.float32))

    out = deep_supervision_forward(intermediates, head_ws, head_bs)
    out = jax.block_until_ready(out)

    ref = reference_forward(intermediates, head_ws, head_bs)
    assert out.shape == (N, c_out, H, W)
    # bf16 activations/resize matrices with f32 accumulation -> loosened tolerance
    np.testing.assert_allclose(np.asarray(out), np.asarray(ref), rtol=2e-2, atol=2e-2)
    print("KERNEL_OK")
</pallas_src>

<mosaic_0001>
module attributes {stable_mosaic.version = 11 : i64} {
  func.func @kernel(%arg0: i32, %arg1: memref<26xf32, #tpu.memory_space<smem>>, %arg2: memref<1x32x4xbf16, #tpu.memory_space<vmem>>, %arg3: memref<16x4xbf16, #tpu.memory_space<vmem>>, %arg4: memref<4x16xbf16, #tpu.memory_space<vmem>>, %arg5: memref<1x32x8xbf16, #tpu.memory_space<vmem>>, %arg6: memref<16x8xbf16, #tpu.memory_space<vmem>>, %arg7: memref<8x16xbf16, #tpu.memory_space<vmem>>, %arg8: memref<1x2x16x16xf32, #tpu.memory_space<vmem>>) attributes {dimension_semantics = [#tpu.dimension_semantics<parallel>], iteration_bounds = array<i64: 2>, scalar_prefetch = 0 : i64, scratch_operands = 0 : i64, tpu.core_type = #tpu.core_type<tc>, window_params = [{transform_indices = @transform_0, window_bounds = array<i64: 26>}, {transform_indices = @transform_1, window_bounds = array<i64: 1, 32, 4>}, {pipeline_mode = #tpu.pipeline_mode<synchronous>, transform_indices = @transform_2, window_bounds = array<i64: 16, 4>}, {pipeline_mode = #tpu.pipeline_mode<synchronous>, transform_indices = @transform_3, window_bounds = array<i64: 4, 16>}, {transform_indices = @transform_4, window_bounds = array<i64: 1, 32, 8>}, {pipeline_mode = #tpu.pipeline_mode<synchronous>, transform_indices = @transform_5, window_bounds = array<i64: 16, 8>}, {pipeline_mode = #tpu.pipeline_mode<synchronous>, transform_indices = @transform_6, window_bounds = array<i64: 8, 16>}, {transform_indices = @transform_7, window_bounds = array<i64: 1, 2, 16, 16>}]} {
    %c0 = arith.constant 0 : index
    %c0_0 = arith.constant 0 : index
    %c0_1 = arith.constant 0 : index
    %0 = vector.load %arg2[%c0, %c0_0, %c0_1] : memref<1x32x4xbf16, #tpu.memory_space<vmem>>, vector<1x32x4xbf16>
    %1 = vector.shape_cast %0 : vector<1x32x4xbf16> to vector<32x4xbf16>
    %c0_2 = arith.constant 0 : index
    %c0_3 = arith.constant 0 : index
    %2 = vector.load %arg4[%c0_2, %c0_3] : memref<4x16xbf16, #tpu.memory_space<vmem>>, vector<4x16xbf16>
    %cst = arith.constant dense<0.000000e+00> : vector<32x16xf32>
    %3 = tpu.matmul %1, %2, %cst {dimension_numbers = #tpu.dot_dimension_numbers<[1], [0], [0], [1], [0, 0, 1, 1], [], []>} : vector<32x4xbf16>, vector<4x16xbf16>, vector<32x16xf32> -> vector<32x16xf32>
    %c0_4 = arith.constant 0 : index
    %c0_5 = arith.constant 0 : index
    %c0_6 = arith.constant 0 : index
    %4 = vector.load %arg5[%c0_4, %c0_5, %c0_6] : memref<1x32x8xbf16, #tpu.memory_space<vmem>>, vector<1x32x8xbf16>
    %5 = vector.shape_cast %4 : vector<1x32x8xbf16> to vector<32x8xbf16>
    %c0_7 = arith.constant 0 : index
    %c0_8 = arith.constant 0 : index
    %6 = vector.load %arg7[%c0_7, %c0_8] : memref<8x16xbf16, #tpu.memory_space<vmem>>, vector<8x16xbf16>
    %cst_9 = arith.constant dense<0.000000e+00> : vector<32x16xf32>
    %7 = tpu.matmul %5, %6, %cst_9 {dimension_numbers = #tpu.dot_dimension_numbers<[1], [0], [0], [1], [0, 0, 1, 1], [], []>} : vector<32x8xbf16>, vector<8x16xbf16>, vector<32x16xf32> -> vector<32x16xf32>
    %c0_10 = arith.constant 0 : index
    %8 = memref.load %arg1[%c0_10] : memref<26xf32, #tpu.memory_space<smem>>
    %9 = vector.extract_strided_slice %3 {offsets = [0, 0], sizes = [4, 16], strides = [1, 1]} : vector<32x16xf32> to vector<4x16xf32>
    %10 = vector.broadcast %8 : f32 to vector<4x16xf32>
    %11 = arith.mulf %10, %9 : vector<4x16xf32>
    %c1 = arith.constant 1 : index
    %12 = memref.load %arg1[%c1] : memref<26xf32, #tpu.memory_space<smem>>
    %13 = vector.extract_strided_slice %3 {offsets = [4, 0], sizes = [4, 16], strides = [1, 1]} : vector<32x16xf32> to vector<4x16xf32>
    %14 = vector.broadcast %12 : f32 to vector<4x16xf32>
    %15 = arith.mulf %14, %13 : vector<4x16xf32>
    %16 = arith.addf %11, %15 : vector<4x16xf32>
    %c2 = arith.constant 2 : index
    %17 = memref.load %arg1[%c2] : memref<26xf32, #tpu.memory_space<smem>>
    %18 = vector.extract_strided_slice %3 {offsets = [8, 0], sizes = [4, 16], strides = [1, 1]} : vector<32x16xf32> to vector<4x16xf32>
    %19 = vector.broadcast %17 : f32 to vector<4x16xf32>
    %20 = arith.mulf %19, %18 : vector<4x16xf32>
    %21 = arith.addf %16, %20 : vector<4x16xf32>
    %c3 = arith.constant 3 : index
    %22 = memref.load %arg1[%c3] : memref<26xf32, #tpu.memory_space<smem>>
    %23 = vector.extract_strided_slice %3 {offsets = [12, 0], sizes = [4, 16], strides = [1, 1]} : vector<32x16xf32> to vector<4x16xf32>
    %24 = vector.broadcast %22 : f32 to vector<4x16xf32>
    %25 = arith.mulf %24, %23 : vector<4x16xf32>
    %26 = arith.addf %21, %25 : vector<4x16xf32>
    %c4 = arith.constant 4 : index
    %27 = memref.load %arg1[%c4] : memref<26xf32, #tpu.memory_space<smem>>
    %28 = vector.extract_strided_slice %3 {offsets = [16, 0], sizes = [4, 16], strides = [1, 1]} : vector<32x16xf32> to vector<4x16xf32>
    %29 = vector.broadcast %27 : f32 to vector<4x16xf32>
    %30 = arith.mulf %29, %28 : vector<4x16xf32>
    %31 = arith.addf %26, %30 : vector<4x16xf32>
    %c5 = arith.constant 5 : index
    %32 = memref.load %arg1[%c5] : memref<26xf32, #tpu.memory_space<smem>>
    %33 = vector.extract_strided_slice %3 {offsets = [20, 0], sizes = [4, 16], strides = [1, 1]} : vector<32x16xf32> to vector<4x16xf32>
    %34 = vector.broadcast %32 : f32 to vector<4x16xf32>
    %35 = arith.mulf %34, %33 : vector<4x16xf32>
    %36 = arith.addf %31, %35 : vector<4x16xf32>
    %c6 = arith.constant 6 : index
    %37 = memref.load %arg1[%c6] : memref<26xf32, #tpu.memory_space<smem>>
    %38 = vector.extract_strided_slice %3 {offsets = [24, 0], sizes = [4, 16], strides = [1, 1]} : vector<32x16xf32> to vector<4x16xf32>
    %39 = vector.broadcast %37 : f32 to vector<4x16xf32>
    %40 = arith.mulf %39, %38 : vector<4x16xf32>
    %41 = arith.addf %36, %40 : vector<4x16xf32>
    %c7 = arith.constant 7 : index
    %42 = memref.load %arg1[%c7] : memref<26xf32, #tpu.memory_space<smem>>
    %43 = vector.extract_strided_slice %3 {offsets = [28, 0], sizes = [4, 16], strides = [1, 1]} : vector<32x16xf32> to vector<4x16xf32>
    %44 = vector.broadcast %42 : f32 to vector<4x16xf32>
    %45 = arith.mulf %44, %43 : vector<4x16xf32>
    %46 = arith.addf %41, %45 : vector<4x16xf32>
    %c0_11 = arith.constant 0 : index
    %c0_12 = arith.constant 0 : index
    %47 = vector.load %arg3[%c0_11, %c0_12] : memref<16x4xbf16, #tpu.memory_space<vmem>>, vector<16x4xbf16>
    %48 = arith.truncf %46 : vector<4x16xf32> to vector<4x16xbf16>
    %cst_13 = arith.constant dense<0.000000e+00> : vector<16x16xf32>
    %49 = tpu.matmul %47, %48, %cst_13 {dimension_numbers = #tpu.dot_dimension_numbers<[1], [0], [0], [1], [0, 0, 1, 1], [], []>} : vector<16x4xbf16>, vector<4x16xbf16>, vector<16x16xf32> -> vector<16x16xf32>
    %c8 = arith.constant 8 : index
    %50 = memref.load %arg1[%c8] : memref<26xf32, #tpu.memory_space<smem>>
    %51 = vector.extract_strided_slice %7 {offsets = [0, 0], sizes = [8, 16], strides = [1, 1]} : vector<32x16xf32> to vector<8x16xf32>
    %52 = vector.broadcast %50 : f32 to vector<8x16xf32>
    %53 = arith.mulf %52, %51 : vector<8x16xf32>
    %c9 = arith.constant 9 : index
    %54 = memref.load %arg1[%c9] : memref<26xf32, #tpu.memory_space<smem>>
    %55 = vector.extract_strided_slice %7 {offsets = [8, 0], sizes = [8, 16], strides = [1, 1]} : vector<32x16xf32> to vector<8x16xf32>
    %56 = vector.broadcast %54 : f32 to vector<8x16xf32>
    %57 = arith.mulf %56, %55 : vector<8x16xf32>
    %58 = arith.addf %53, %57 : vector<8x16xf32>
    %c10 = arith.constant 10 : index
    %59 = memref.load %arg1[%c10] : memref<26xf32, #tpu.memory_space<smem>>
    %60 = vector.extract_strided_slice %7 {offsets = [16, 0], sizes = [8, 16], strides = [1, 1]} : vector<32x16xf32> to vector<8x16xf32>
    %61 = vector.broadcast %59 : f32 to vector<8x16xf32>
    %62 = arith.mulf %61, %60 : vector<8x16xf32>
    %63 = arith.addf %58, %62 : vector<8x16xf32>
    %c11 = arith.constant 11 : index
    %64 = memref.load %arg1[%c11] : memref<26xf32, #tpu.memory_space<smem>>
    %65 = vector.extract_strided_slice %7 {offsets = [24, 0], sizes = [8, 16], strides = [1, 1]} : vector<32x16xf32> to vector<8x16xf32>
    %66 = vector.broadcast %64 : f32 to vector<8x16xf32>
    %67 = arith.mulf %66, %65 : vector<8x16xf32>
    %68 = arith.addf %63, %67 : vector<8x16xf32>
    %c0_14 = arith.constant 0 : index
    %c0_15 = arith.constant 0 : index
    %69 = vector.load %arg6[%c0_14, %c0_15] : memref<16x8xbf16, #tpu.memory_space<vmem>>, vector<16x8xbf16>
    %70 = arith.truncf %68 : vector<8x16xf32> to vector<8x16xbf16>
    %cst_16 = arith.constant dense<0.000000e+00> : vector<16x16xf32>
    %71 = tpu.matmul %69, %70, %cst_16 {dimension_numbers = #tpu.dot_dimension_numbers<[1], [0], [0], [1], [0, 0, 1, 1], [], []>} : vector<16x8xbf16>, vector<8x16xbf16>, vector<16x16xf32> -> vector<16x16xf32>
    %72 = arith.addf %49, %71 : vector<16x16xf32>
    %c12 = arith.constant 12 : index
    %73 = memref.load %arg1[%c12] : memref<26xf32, #tpu.memory_space<smem>>
    %74 = vector.broadcast %73 : f32 to vector<16x16xf32>
    %75 = arith.addf %72, %74 : vector<16x16xf32>
    %c0_17 = arith.constant 0 : index
    %c0_18 = arith.constant 0 : index
    %c0_19 = arith.constant 0 : index
    %c0_20 = arith.constant 0 : index
    %76 = vector.load %arg8[%c0_17, %c0_18, %c0_19, %c0_20] : memref<1x2x16x16xf32, #tpu.memory_space<vmem>>, vector<1x1x16x16xf32>
    %77 = vector.shape_cast %76 : vector<1x1x16x16xf32> to vector<16x16xf32>
    %78 = vector.shape_cast %75 : vector<16x16xf32> to vector<1x1x16x16xf32>
    tpu.vector_store %arg8[%c0_17, %c0_18, %c0_19, %c0_20], %78 {strides = array<i32>} : memref<1x2x16x16xf32, #tpu.memory_space<vmem>>, vector<1x1x16x16xf32>,
    %c13 = arith.constant 13 : index
    %79 = memref.load %arg1[%c13] : memref<26xf32, #tpu.memory_space<smem>>
    %80 = vector.extract_strided_slice %3 {offsets = [0, 0], sizes = [4, 16], strides = [1, 1]} : vector<32x16xf32> to vector<4x16xf32>
    %81 = vector.broadcast %79 : f32 to vector<4x16xf32>
    %82 = arith.mulf %81, %80 : vector<4x16xf32>
    %c14 = arith.constant 14 : index
    %83 = memref.load %arg1[%c14] : memref<26xf32, #tpu.memory_space<smem>>
    %84 = vector.extract_strided_slice %3 {offsets = [4, 0], sizes = [4, 16], strides = [1, 1]} : vector<32x16xf32> to vector<4x16xf32>
    %85 = vector.broadcast %83 : f32 to vector<4x16xf32>
    %86 = arith.mulf %85, %84 : vector<4x16xf32>
    %87 = arith.addf %82, %86 : vector<4x16xf32>
    %c15 = arith.constant 15 : index
    %88 = memref.load %arg1[%c15] : memref<26xf32, #tpu.memory_space<smem>>
    %89 = vector.extract_strided_slice %3 {offsets = [8, 0], sizes = [4, 16], strides = [1, 1]} : vector<32x16xf32> to vector<4x16xf32>
    %90 = vector.broadcast %88 : f32 to vector<4x16xf32>
    %91 = arith.mulf %90, %89 : vector<4x16xf32>
    %92 = arith.addf %87, %91 : vector<4x16xf32>
    %c16 = arith.constant 16 : index
    %93 = memref.load %arg1[%c16] : memref<26xf32, #tpu.memory_space<smem>>
    %94 = vector.extract_strided_slice %3 {offsets = [12, 0], sizes = [4, 16], strides = [1, 1]} : vector<32x16xf32> to vector<4x16xf32>
    %95 = vector.broadcast %93 : f32 to vector<4x16xf32>
    %96 = arith.mulf %95, %94 : vector<4x16xf32>
    %97 = arith.addf %92, %96 : vector<4x16xf32>
    %c17 = arith.constant 17 : index
    %98 = memref.load %arg1[%c17] : memref<26xf32, #tpu.memory_space<smem>>
    %99 = vector.extract_strided_slice %3 {offsets = [16, 0], sizes = [4, 16], strides = [1, 1]} : vector<32x16xf32> to vector<4x16xf32>
    %100 = vector.broadcast %98 : f32 to vector<4x16xf32>
    %101 = arith.mulf %100, %99 : vector<4x16xf32>
    %102 = arith.addf %97, %101 : vector<4x16xf32>
    %c18 = arith.constant 18 : index
    %103 = memref.load %arg1[%c18] : memref<26xf32, #tpu.memory_space<smem>>
    %104 = vector.extract_strided_slice %3 {offsets = [20, 0], sizes = [4, 16], strides = [1, 1]} : vector<32x16xf32> to vector<4x16xf32>
    %105 = vector.broadcast %103 : f32 to vector<4x16xf32>
    %106 = arith.mulf %105, %104 : vector<4x16xf32>
    %107 = arith.addf %102, %106 : vector<4x16xf32>
    %c19 = arith.constant 19 : index
    %108 = memref.load %arg1[%c19] : memref<26xf32, #tpu.memory_space<smem>>
    %109 = vector.extract_strided_slice %3 {offsets = [24, 0], sizes = [4, 16], strides = [1, 1]} : vector<32x16xf32> to vector<4x16xf32>
    %110 = vector.broadcast %108 : f32 to vector<4x16xf32>
    %111 = arith.mulf %110, %109 : vector<4x16xf32>
    %112 = arith.addf %107, %111 : vector<4x16xf32>
    %c20 = arith.constant 20 : index
    %113 = memref.load %arg1[%c20] : memref<26xf32, #tpu.memory_space<smem>>
    %114 = vector.extract_strided_slice %3 {offsets = [28, 0], sizes = [4, 16], strides = [1, 1]} : vector<32x16xf32> to vector<4x16xf32>
    %115 = vector.broadcast %113 : f32 to vector<4x16xf32>
    %116 = arith.mulf %115, %114 : vector<4x16xf32>
    %117 = arith.addf %112, %116 : vector<4x16xf32>
    %c0_21 = arith.constant 0 : index
    %c0_22 = arith.constant 0 : index
    %118 = vector.load %arg3[%c0_21, %c0_22] : memref<16x4xbf16, #tpu.memory_space<vmem>>, vector<16x4xbf16>
    %119 = arith.truncf %117 : vector<4x16xf32> to vector<4x16xbf16>
    %cst_23 = arith.constant dense<0.000000e+00> : vector<16x16xf32>
    %120 = tpu.matmul %118, %119, %cst_23 {dimension_numbers = #tpu.dot_dimension_numbers<[1], [0], [0], [1], [0, 0, 1, 1], [], []>} : vector<16x4xbf16>, vector<4x16xbf16>, vector<16x16xf32> -> vector<16x16xf32>
    %c21 = arith.constant 21 : index
    %121 = memref.load %arg1[%c21] : memref<26xf32, #tpu.memory_space<smem>>
    %122 = vector.extract_strided_slice %7 {offsets = [0, 0], sizes = [8, 16], strides = [1, 1]} : vector<32x16xf32> to vector<8x16xf32>
    %123 = vector.broadcast %121 : f32 to vector<8x16xf32>
    %124 = arith.mulf %123, %122 : vector<8x16xf32>
    %c22 = arith.constant 22 : index
    %125 = memref.load %arg1[%c22] : memref<26xf32, #tpu.memory_space<smem>>
    %126 = vector.extract_strided_slice %7 {offsets = [8, 0], sizes = [8, 16], strides = [1, 1]} : vector<32x16xf32> to vector<8x16xf32>
    %127 = vector.broadcast %125 : f32 to vector<8x16xf32>
    %128 = arith.mulf %127, %126 : vector<8x16xf32>
    %129 = arith.addf %124, %128 : vector<8x16xf32>
    %c23 = arith.constant 23 : index
    %130 = memref.load %arg1[%c23] : memref<26xf32, #tpu.memory_space<smem>>
    %131 = vector.extract_strided_slice %7 {offsets = [16, 0], sizes = [8, 16], strides = [1, 1]} : vector<32x16xf32> to vector<8x16xf32>
    %132 = vector.broadcast %130 : f32 to vector<8x16xf32>
    %133 = arith.mulf %132, %131 : vector<8x16xf32>
    %134 = arith.addf %129, %133 : vector<8x16xf32>
    %c24 = arith.constant 24 : index
    %135 = memref.load %arg1[%c24] : memref<26xf32, #tpu.memory_space<smem>>
    %136 = vector.extract_strided_slice %7 {offsets = [24, 0], sizes = [8, 16], strides = [1, 1]} : vector<32x16xf32> to vector<8x16xf32>
    %137 = vector.broadcast %135 : f32 to vector<8x16xf32>
    %138 = arith.mulf %137, %136 : vector<8x16xf32>
    %139 = arith.addf %134, %138 : vector<8x16xf32>
    %c0_24 = arith.constant 0 : index
    %c0_25 = arith.constant 0 : index
    %140 = vector.load %arg6[%c0_24, %c0_25] : memref<16x8xbf16, #tpu.memory_space<vmem>>, vector<16x8xbf16>
    %141 = arith.truncf %139 : vector<8x16xf32> to vector<8x16xbf16>
    %cst_26 = arith.constant dense<0.000000e+00> : vector<16x16xf32>
    %142 = tpu.matmul %140, %141, %cst_26 {dimension_numbers = #tpu.dot_dimension_numbers<[1], [0], [0], [1], [0, 0, 1, 1], [], []>} : vector<16x8xbf16>, vector<8x16xbf16>, vector<16x16xf32> -> vector<16x16xf32>
    %143 = arith.addf %120, %142 : vector<16x16xf32>
    %c25 = arith.constant 25 : index
    %144 = memref.load %arg1[%c25] : memref<26xf32, #tpu.memory_space<smem>>
    %145 = vector.broadcast %144 : f32 to vector<16x16xf32>
    %146 = arith.addf %143, %145 : vector<16x16xf32>
    %c0_27 = arith.constant 0 : index
    %c1_28 = arith.constant 1 : index
    %c0_29 = arith.constant 0 : index
    %c0_30 = arith.constant 0 : index
    %147 = vector.load %arg8[%c0_27, %c1_28, %c0_29, %c0_30] : memref<1x2x16x16xf32, #tpu.memory_space<vmem>>, vector<1x1x16x16xf32>
    %148 = vector.shape_cast %147 : vector<1x1x16x16xf32> to vector<16x16xf32>
    %149 = vector.shape_cast %146 : vector<16x16xf32> to vector<1x1x16x16xf32>
    tpu.vector_store %arg8[%c0_27, %c1_28, %c0_29, %c0_30], %149 {strides = array<i32>} : memref<1x2x16x16xf32, #tpu.memory_space<vmem>>, vector<1x1x16x16xf32>,
    return
  }
  func.func @transform_0(%arg0: i32) -> i32 {
    %c0_i32 = arith.constant 0 : i32
    %c0_i32_0 = arith.constant 0 : i32
    return %c0_i32 : i32
  }
  func.func @transform_1(%arg0: i32) -> (i32, i32, i32) {
    %c0_i32 = arith.constant 0 : i32
    %c0_i32_0 = arith.constant 0 : i32
    %c0_i32_1 = arith.constant 0 : i32
    return %arg0, %c0_i32, %c0_i32_0 : i32, i32, i32
  }
  func.func @transform_2(%arg0: i32) -> (i32, i32) {
    %c0_i32 = arith.constant 0 : i32
    %c0_i32_0 = arith.constant 0 : i32
    %c0_i32_1 = arith.constant 0 : i32
    return %c0_i32, %c0_i32_0 : i32, i32
  }
  func.func @transform_3(%arg0: i32) -> (i32, i32) {
    %c0_i32 = arith.constant 0 : i32
    %c0_i32_0 = arith.constant 0 : i32
    %c0_i32_1 = arith.constant 0 : i32
    return %c0_i32, %c0_i32_0 : i32, i32
  }
  func.func @transform_4(%arg0: i32) -> (i32, i32, i32) {
    %c0_i32 = arith.constant 0 : i32
    %c0_i32_0 = arith.constant 0 : i32
    %c0_i32_1 = arith.constant 0 : i32
    return %arg0, %c0_i32, %c0_i32_0 : i32, i32, i32
  }
  func.func @transform_5(%arg0: i32) -> (i32, i32) {
    %c0_i32 = arith.constant 0 : i32
    %c0_i32_0 = arith.constant 0 : i32
    %c0_i32_1 = arith.constant 0 : i32
    return %c0_i32, %c0_i32_0 : i32, i32
  }
  func.func @transform_6(%arg0: i32) -> (i32, i32) {
    %c0_i32 = arith.constant 0 : i32
    %c0_i32_0 = arith.constant 0 : i32
    %c0_i32_1 = arith.constant 0 : i32
    return %c0_i32, %c0_i32_0 : i32, i32
  }
  func.func @transform_7(%arg0: i32) -> (i32, i32, i32, i32) {
    %c0_i32 = arith.constant 0 : i32
    %c0_i32_0 = arith.constant 0 : i32
    %c0_i32_1 = arith.constant 0 : i32
    %c0_i32_2 = arith.constant 0 : i32
    return %arg0, %c0_i32, %c0_i32_0, %c0_i32_1 : i32, i32, i32, i32
  }
}

</mosaic_0001>

<bundles_post_ra>
// kernel: tpu_custom_call.1
= control target key start
LH: loop header
LB: loop body
LE: loop exit
PB: predicated region body
PF: predicated region fallthrough
CT: control target
= control target key end

     0   :  { %s1467_s0 = inlined_call_operand.vmem [shape: f32[26], index: 0, kind: input, shape index: {}]   ;;  %s1468_s1 = inlined_call_operand.vmem [shape: bf16[2,32,4], index: 1, kind: input, shape index: {}]   ;;  %s1469_s2 = inlined_call_operand.vmem [shape: bf16[16,4], index: 2, kind: input, shape index: {}]   ;;  %s1470_s3 = inlined_call_operand.vmem [shape: bf16[4,16], index: 3, kind: input, shape index: {}]   ;;  %s1471_s4 = inlined_call_operand.vmem [shape: bf16[2,32,8], index: 4, kind: input, shape index: {}]   ;;  %s1472_s5 = inlined_call_operand.vmem [shape: bf16[16,8], index: 5, kind: input, shape index: {}]   ;;  %s1473_s6 = inlined_call_operand.vmem [shape: bf16[8,16], index: 6, kind: input, shape index: {}]   ;;  %s1474_s7 = inlined_call_operand.hbm [shape: f32[2,2,16,16], index: 7, kind: output, shape index: {}]  }
   0x1   :  { %1479 = sst [smem:[#allocation12_spill]] %s1467_s0 }
   0x2   :  { %1480 = sst [smem:[#allocation13_spill]] %s1468_s1 }
   0x3   :  { %1481 = sst [smem:[#allocation14_spill]] %s1470_s3 }
   0x4   :  { %1482 = sst [smem:[#allocation15_spill]] %s1471_s4 }
   0x5   :  { %1483 = sst [smem:[#allocation16_spill]] %s1473_s6 }
   0x6   :  { %12 = vsyncpa [#allocation4], 0 }
   0x7   :  { %13 = vsyncpa [#allocation3], 0 }
   0x8   :  { %15 = vsyncpa [#allocation3 + $0x1], 0  ;;  %s1217_s24 = smov 0   ;;  %s1219_s25 = smov 0  }
   0x9   :  { %s1221_s26 = smov 0   ;;  %s1223_s27 = smov 0  }
   0xa LB: > { %1484 = sst [smem:[#allocation8_spill]] %s1165_s26  ;;  %s1238_s28 = sadd.s32 4294967295, %s1169_s27   ;;  %s1169_s27 = sphi %s1223_s27, %s1497_s27   ;;  %s1165_s26 = sphi %s1221_s26, %s1499_s26   ;;  %s1161_s25 = sphi %s1219_s25, %s1501_s25   ;;  %s1157_s24 = sphi %s1217_s24, %s1500_s24  }
   0xb   : > { %s912_s29 = sadd.s32 4294967294, %s1169_s27   ;;  %s1242_s30 = sadd.s32 1, %s1169_s27  }
   0xc   : > { %1485 = sst [smem:[#allocation9_spill]] %s1242_s30  ;;  %s185_s8 = sadd.s32 1, %s1165_s26 }
   0xd   : > { %s182_s9 = ssub.s32 %s1169_s27, %s1242_s30  ;;  %p195_p0 = scmp.ne.s32.totalorder %s1165_s26, %s1161_s25 }
   0xe   : > { %p183_p1 = scmp.eq.s32.totalorder %s182_s9, 0  ;;  %p196_p2 = scmp.eq.s32.totalorder %s1238_s28, 1 }
   0xf   : > { %p201_p3 = scmp.ne.s32.totalorder %s1161_s25, %s1157_s24  ;;  %p202_p4 = scmp.eq.s32.totalorder %s912_s29, 1 }
  0x10   : > { %s1253_s10 = scalar_select %p183_p1, %s1165_s26, %s185_s8  }
  0x11   : > { %p1255_p5 = por %p196_p2, %p195_p0  ;;  %p1259_p6 = por %p202_p4, %p201_p3 }
  0x12   : > { %1486 = sst [smem:[#allocation10_spill]] %s1253_s10  ;;  %p913_p7 = scmp.ge.s32.totalorder %s1169_s27, 1 }
  0x13   : > { %s1488_s12 = scalar_select %p1259_p6, 1, 0 }
  0x14   : > { %p209_p8 = scmp.lt.s32.totalorder %s1169_s27, 3  ;;  %p1040_p9 = scmp.eq.s32.totalorder %s1238_s28, 0 }
  0x15   : > { %1489 = sst [smem:[#allocation11_spill]] %s1488_s12 }
  0x16   : > { %p1266_p10 = pnand %p913_p7, %p209_p8  ;;  %s1491_s0 = sld [smem:[#allocation12_spill]] }
  0x18   : > { %p1032_p11 = pneg %p1266_p10 }
  0x1a   : > { %p1033_p12 = pnand %p1040_p9, %p1032_p11 }
  0x1c   : > { %s222_s16 = sshll.u32 %s1491_s0, 4  ;;  %p1090_p0 = pneg %p1033_p12  ;;  %s223_s16 = int_to_ptr.vmem [resolvable:$true] %s222_s16 }
  0x1d   : > { %s1088_s17 = scalar_lea.vmem %s223_s16, 16  ;;  %p1096_p3 = scmp.lt.s32.totalorder %s223_s16, %s223_s16 }
  0x1e   : > { %p1089_p13 = scmp.ne.s32.totalorder %s223_s16, %s1088_s17  ;;  %p1097_p4 = scmp.lt.s32.totalorder %s1088_s17, %s1088_s17 }
  0x20   : > { %p1091_p1 = pnand %p1090_p0, %p1089_p13  ;;  %p1098_p7 = por %p1097_p4, %p1096_p3 }
  0x22   : > { %p1092_p2 = pneg %p1091_p1 }
  0x24   : > { %p1099_p8 = pnand %p1098_p7, %p1092_p2 }
  0x26   : > { %1102 = shalt.err (!%p1099_p8)
}
  0x27   : > { %s1171_s18 = smov [#allocation2]   ;;  %263 = sbr.rel (%p1266_p10) target bundleno = 538 (0x21a), region = 48 }
  0x28   : > { %1035 = dma.vmem_to_smem (!%p1033_p12), %s223_s16, 16, %s1171_s18, [#allocation4]  }
  0x2e   : > { %1148 = dma.done.wait (%p1040_p9), [#allocation4], 16  }
  0x2f   : > { %1150 = vsyncadd (%p1040_p9), [#allocation4], 4294967280 }
  0x30   : > { %269 = sfence }
  0x31   : > { %s1492_s3 = sld [smem:[#allocation14_spill]]  ;;  %vm334_vm0 = vcmask 1041408   ;;  %s1493_s6 = sld [smem:[#allocation16_spill]]  ;;  %vm409_vm1 = vcmask 1043456   ;;  %vm327_vm2 = vcmask 31744   ;;  %vm402_vm3 = vcmask 64512  }
  0x32   : > { %p301_p9 = scmp.lt.s32.totalorder %s1238_s28, 1  ;;  %s1494_s1 = sld [smem:[#allocation13_spill]]  ;;  %v1172_v8 = vmov 0.0   ;;  %vm1173_vm4 = vmmov 0   ;;  %vm634_vm5 = vcmask 130048  }
  0x33   : > { %s1495_s4 = sld [smem:[#allocation15_spill]]  ;;  %s1311_s17 = sld [smem:[#allocation2 + $0x4]] }
  0x34   : > { %s302_s23 = scalar_select %p301_p9, %s1238_s28, 1 }
  0x35   : > { %s1313_s18 = sld [smem:[#allocation2 + $0x5]]  ;;  %s1315_s19 = sld [smem:[#allocation2 + $0x11]] }
  0x36   : > { %s971_s29 = sshll.u32 %s302_s23, 4  ;;  %s1317_s20 = sld [smem:[#allocation2 + $0x12]] }
  0x37   : > { %v316_v0 = vld [vmem:[%s1492_s3] sm:$0x3]  ;;  %s1319_s21 = sld [smem:[#allocation2]]  ;;  %s1321_s22 = sld [smem:[#allocation2 + $0x1]] }
  0x38   : > { %v391_v1 = vld [vmem:[%s1493_s6] sm:$0xf]  ;;  %1024 = vmatprep.subr.msk.bf16.mxu0 %vm334_vm0, %v316_v0  ;;  %v336_v2 = vsel %vm334_vm0, %v316_v0, 0  ;;  %s305_s13 = scalar_lea.vmem %s1494_s1, %s971_s29  ;;  %s1323_s23 = sld [smem:[#allocation2 + $0xd]] }
  0x39   : > { %1025 = vmatprep.subr.msk.bf16.mxu1 %vm409_vm1, %v391_v1  ;;  %v411_v3 = vsel %vm409_vm1, %v391_v1, 0  ;;  %989 = vmatpush3.bf16.msra.mxu0 %v336_v2  ;;  %s310_s16 = scalar_lea.vmem %s1495_s4, %s971_s29  ;;  %v1080_v4 = vld [vmem:[%s305_s13] sm:$0xff]   ;;  %v1082_v6 = vld [vmem:[%s305_s13 + $0x8] sm:$0xff]   ;;  %s1325_s29 = sld [smem:[#allocation2 + $0xe]]  ;;  %v484_v9 = vstv %s1311_s17 }
  0x3a   : > { %995 = vmatpush3.bf16.msra.mxu1 %v411_v3  ;;  %v1081_v5 = vld [vmem:[%s310_s16] sm:$0xff]   ;;  %990 = vmatprep.mubr.msk.bf16.mxu0 %vm327_vm2, %v1080_v4  ;;  %v1083_v7 = vld [vmem:[%s310_s16 + $0x8] sm:$0xff]   ;;  %s1327_s8 = sld [smem:[#allocation2 + $0x8]]  ;;  %s1329_s9 = sld [smem:[#allocation2 + $0xa]] }
  0x3b   : > { %996 = vmatprep.mubr.msk.bf16.mxu1 %vm402_vm3, %v1081_v5  ;;  %1000 = vmatprep.subr.bf16.mxu0 %v1172_v8  ;;  %s1331_s13 = sld [smem:[#allocation2 + $0x15]]  ;;  %s1333_s14 = sld [smem:[#allocation2 + $0x17]]  ;;  %v488_v10 = vstv %s1313_s18  ;;  %v659_v11 = vstv %s1315_s19 }
  0x3c   : > { %991 = vmatmul.mubr.msk.bf16.vlgmr.msra.gmra.mrb[0].mxu0 %vm327_vm2, %v1082_v6  ;;  %1006 = vmatprep.subr.bf16.mxu1 %v1172_v8  ;;  %s1335_s15 = sld [smem:[#allocation2 + $0x6]]  ;;  %s1337_s16 = sld [smem:[#allocation2 + $0x7]]  ;;  %v663_v12 = vstv %s1317_s20 }
  0x3d   : > { %997 = vmatmul.mubr.msk.bf16.vlgmr.msra.gmra.mrb[0].mxu1 %vm402_vm3, %v1083_v7  ;;  %1002 = vmatprep.mubr.msk.bf16.mxu0 %vm1173_vm4, %v1172_v8  ;;  %s1339_s0 = sld [smem:[#allocation2 + $0x14]]  ;;  %s1341_s1 = sld [smem:[#allocation2 + $0xb]]  ;;  %v466_v13 = vstv %s1321_s22  ;;  %v463_v15 = vstv %s1319_s21 }
  0x3e   : > { %1008 = vmatprep.mubr.msk.bf16.mxu1 %vm1173_vm4, %v1172_v8  ;;  %s1343_s3 = sld [smem:[#allocation2 + $0x2]]  ;;  %s1345_s4 = sld [smem:[#allocation2 + $0x18]]  ;;  %v638_v16 = vstv %s1323_s23 }
  0x3f   : > { %s1347_s6 = sld [smem:[#allocation2 + $0x3]]  ;;  %s1349_s10 = sld [smem:[#allocation2 + $0xf]]  ;;  %v641_v17 = vstv %s1325_s29 }
  0x40   : > { %s1351_s26 = sld [smem:[#allocation2 + $0x10]]  ;;  %s1353_s30 = sld [smem:[#allocation2 + $0x9]]  ;;  %v509_v18 = vstv %s1327_s8  ;;  %v516_v20 = vstv %s1329_s9 }
  0x41   : > { %s1355_s12 = sld [smem:[#allocation2 + $0x16]]  ;;  %v691_v21 = vstv %s1333_s14  ;;  %v684_v23 = vstv %s1331_s13  ;;  %s1376_s17 = sld [smem:[#allocation2 + $0x13]] }
  0x42   : > { %v495_v24 = vstv %s1335_s15  ;;  %v499_v28 = vstv %s1337_s16  ;;  %s298_s18 = sand.u32 1, %s1161_s25   ;;  %s963_s20 = sld [smem:[#allocation2 + $0x19]] }
  0x43   : > { %v674_v29 = vstv %s1339_s0  ;;  %v520_v30 = vstv %s1341_s1  ;;  %s918_s19 = sshll.u32 %s298_s18, 5  ;;  %s973_s23 = sshll.u32 %s1238_s28, 9 }
  0x44   : > { %v695_v33 = vstv %s1345_s4  ;;  %v473_v35 = vstv %s1343_s3  ;;  %s300_s21 = scalar_lea.vmem [#allocation5], %s918_s19  ;;  %s1418_s9 = scalar_lea.hbm %s1474_s7, %s973_s23 }
  0x45   : > { %v477_v36 = vstv %s1347_s6  ;;  %v648_v39 = vstv %s1349_s10  ;;  %s826_s22 = sshll.u32 %s300_s21, 4  ;;  %s1426_s28 = scalar_lea.sflag [#allocation3], %s298_s18  ;;  %s1420_s22 = int_to_ptr.vmem [resolvable:$true] %s826_s22 }
  0x46   : > { %v652_v40 = vstv %s1351_s26  ;;  %v512_v44 = vstv %s1353_s30  ;;  %s1103_s13 = scalar_lea.vmem %s1420_s22, 512  ;;  %s1174_s14 = smov [#allocation5]  }
  0x47   : > { %v687_v45 = vstv %s1355_s12  ;;  %v670_v7 = vstv %s1376_s17  ;;  %s946_s12 = sld [smem:[#allocation2 + $0xc]]  ;;  %p1104_p10 = scmp.ne.s32.totalorder %s1420_s22, %s1103_s13 }
  0x48   : > { %s1107_s15 = sshll.u32 %s1174_s14, 4  ;;  %s1108_s15 = int_to_ptr.vmem [resolvable:$false] %s1107_s15 }
  0x49   : > { %p1105_p11 = pnand %p1104_p10, %p1255_p5  ;;  %s1109_s16 = scalar_lea.vmem %s1108_s15, 1024 }
  0x4a   : > { %p1110_p13 = scmp.lt.s32.totalorder %s1420_s22, %s1108_s15  ;;  %p1111_p0 = scmp.lt.s32.totalorder %s1109_s16, %s1103_s13 }
  0x4b   : > { %p1106_p12 = pneg %p1105_p11 }
  0x4c   : > { %p1112_p1 = por %p1111_p0, %p1110_p13 }
  0x4e   : > { %p1113_p2 = pnand %p1112_p1, %p1106_p12 }
 0x10f   : > { %v992_v14 = vpop.f32.mrb[0].mxu0 }
 0x110   : > { %v998_v19 = vpop.f32.mrb[0].mxu1  ;;  %v372_v22 = vpop.f32.mrb[1].mxu0  ;;  %v489_v46 = vmul.f32 %v992_v14, %v488_v10  ;;  %v664_v58 = vmul.f32 %v992_v14, %v663_v12  ;;  %v485_v2 = vmul.f32 %v992_v14, %v484_v9  ;;  %v660_v6 = vmul.f32 %v992_v14, %v659_v11 }
 0x111   : > { %v467_v25 = vmul.f32 %v466_v13, %v372_v22  ;;  %v447_v26 = vpop.f32.mrb[1].mxu1  ;;  %v993_v27 = vpop.f32.mrb[2].mxu0  ;;  %v642_v31 = vmul.f32 %v641_v17, %v372_v22  ;;  %v464_v37 = vmul.f32 %v463_v15, %v372_v22  ;;  %v639_v42 = vmul.f32 %v638_v16, %v372_v22 }
 0x112   : > { %v999_v32 = vpop.f32.mrb[2].mxu1  ;;  %v375_v34 = vpop.f32.mrb[3].mxu0  ;;  %v510_v48 = vmul.f32 %v509_v18, %v447_v26  ;;  %v517_v50 = vmul.f32 %v998_v19, %v516_v20  ;;  %v685_v52 = vmul.f32 %v684_v23, %v447_v26  ;;  %v692_v59 = vmul.f32 %v998_v19, %v691_v21 }
 0x113   : > { %v469_v38 = vrot.slane %v467_v25, 4  ;;  %v450_v41 = vpop.f32.mrb[3].mxu1  ;;  %v644_v43 = vrot.slane %v642_v31, 4  ;;  %v474_v49 = vmul.f32 %v473_v35, %v375_v34  ;;  %v478_v53 = vmul.f32 %v477_v36, %v375_v34 }
 0x114   : > { %v649_v55 = vmul.f32 %v648_v39, %v375_v34  ;;  %v653_v56 = vmul.f32 %v652_v40, %v375_v34  ;;  %v513_v57 = vmul.f32 %v512_v44, %v450_v41  ;;  %v688_v61 = vmul.f32 %v687_v45, %v450_v41  ;;  %v1086_v39 = vld [vmem:[%s1472_s5] sm:$0xff]  }
 0x115   : > { %v471_v47 = vadd.f32 %v469_v38, %v464_v37  ;;  %v646_v51 = vadd.f32 %v644_v43, %v639_v42  ;;  %v480_v60 = vrot.slane %v478_v53, 4  ;;  %v521_v62 = vmul.f32 %v999_v32, %v520_v30  ;;  %v1085_v37 = vld [vmem:[%s1469_s2] sm:$0xff]  }
 0x116   : > { %v655_v0 = vrot.slane %v653_v56, 4  ;;  %v514_v1 = vadd.f32 %v513_v57, %v510_v48  ;;  %v696_v3 = vmul.f32 %v999_v32, %v695_v33  ;;  %v689_v5 = vadd.f32 %v688_v61, %v685_v52  ;;  %v1087_v41 = vld [vmem:[%s1469_s2] sm:$0xff]  }
 0x117   : > { %v475_v54 = vadd.f32 %v474_v49, %v471_v47  ;;  %v650_v63 = vadd.f32 %v649_v55, %v646_v51  ;;  %v491_v15 = vrot.slane %v489_v46, 4  ;;  %v500_v16 = vmul.f32 %v993_v27, %v499_v28  ;;  %v1084_v28 = vld [vmem:[%s1472_s5] sm:$0xff]  }
 0x118   : > { %v518_v13 = vadd.f32 %v517_v50, %v514_v1  ;;  %v693_v18 = vadd.f32 %v692_v59, %v689_v5  ;;  %v666_v12 = vrot.slane %v664_v58, 4  ;;  %v675_v19 = vmul.f32 %v993_v27, %v674_v29 }
 0x119   : > { %v482_v4 = vadd.f32 %v480_v60, %v475_v54  ;;  %v657_v10 = vadd.f32 %v655_v0, %v650_v63  ;;  %v496_v22 = vmul.f32 %v993_v27, %v495_v24  ;;  %v671_v26 = vmul.f32 %v993_v27, %v670_v7 }
 0x11a   : > { %v522_v21 = vadd.f32 %v521_v62, %v518_v13  ;;  %v697_v23 = vadd.f32 %v696_v3, %v693_v18  ;;  %v502_v31 = vrot.slane %v500_v16, 4  ;;  %v677_v11 = vrot.slane %v675_v19, 4 }
 0x11b   : > { %v486_v17 = vadd.f32 %v485_v2, %v482_v4  ;;  %v661_v20 = vadd.f32 %v660_v6, %v657_v10  ;;  %v631_v47 = vstv %s946_s12  ;;  %v806_v59 = vstv %s963_s20 }
 0x11c   : > { %v525_v9 = vpack.c.bf16 %v522_v21, %v522_v21  ;;  %v700_v33 = vpack.c.bf16 %v697_v23, %v697_v23 }
 0x11d   : > { %v493_v25 = vadd.f32 %v491_v15, %v486_v17  ;;  %v668_v30 = vadd.f32 %v666_v12, %v661_v20 }
 0x11e   : > { %v535_v14 = vsel %vm409_vm1, %v525_v9, 0  ;;  %v710_v27 = vsel %vm409_vm1, %v700_v33, 0 }
 0x11f   : > { %v497_v32 = vadd.f32 %v496_v22, %v493_v25  ;;  %v672_v34 = vadd.f32 %v671_v26, %v668_v30  ;;  %1001 = vmatpush3.bf16.msra.mxu0 %v535_v14 }
 0x120   : > { %1012 = vmatprep.subr.bf16.mxu0 %v1172_v8 }
 0x121   : > { %v504_v29 = vadd.f32 %v502_v31, %v497_v32  ;;  %v679_v24 = vadd.f32 %v677_v11, %v672_v34 }
 0x122   : > { %1003 = vmatmul.mubr.msk.bf16.vlgmr.msra.gmra.mrb[4].mxu0 %vm402_vm3, %v1084_v28 }
 0x123   : > { %v507_v35 = vpack.c.bf16 %v504_v29, %v504_v29  ;;  %1013 = vmatpush3.bf16.msra.mxu0 %v710_v27  ;;  %v682_v38 = vpack.c.bf16 %v679_v24, %v679_v24  ;;  %1014 = vmatprep.mubr.msk.bf16.mxu0 %vm1173_vm4, %v1172_v8 }
 0x125   : > { %v587_v36 = vsel %vm334_vm0, %v507_v35, 0  ;;  %v762_v40 = vsel %vm334_vm0, %v682_v38, 0 }
 0x126   : > { %1007 = vmatpush3.bf16.msra.mxu1 %v587_v36 }
 0x127   : > { %1018 = vmatprep.subr.bf16.mxu1 %v1172_v8 }
 0x129   : > { %1009 = vmatmul.mubr.msk.bf16.vlgmr.msra.gmra.mrb[4].mxu1 %vm327_vm2, %v1085_v37 }
 0x12a   : > { %1019 = vmatpush3.bf16.msra.mxu1 %v762_v40  ;;  %1020 = vmatprep.mubr.msk.bf16.mxu1 %vm1173_vm4, %v1172_v8 }
 0x12b   : > { %1015 = vmatmul.mubr.msk.bf16.vlgmr.msra.gmra.mrb[8].mxu0 %vm402_vm3, %v1086_v39 }
 0x131   : > { %1021 = vmatmul.mubr.msk.bf16.vlgmr.msra.gmra.mrb[8].mxu1 %vm327_vm2, %v1087_v41 }
 0x1f5   : > { %v571_v42 = vpop.f32.mrb[4].mxu0 }
 0x1f6   : > { %v1004_v43 = vpop.f32.mrb[5].mxu0 }
 0x1f7   : > { %v574_v44 = vpop.f32.mrb[6].mxu0 }
 0x1f8   : > { %v1005_v45 = vpop.f32.mrb[7].mxu0 }
 0x1fc   : > { %v623_v46 = vpop.f32.mrb[4].mxu1 }
 0x1fd   : > { %v624_v8 = vadd.f32 %v623_v46, %v571_v42  ;;  %v1010_v48 = vpop.f32.mrb[5].mxu1 }
 0x1fe   : > { %v626_v49 = vpop.f32.mrb[6].mxu1  ;;  %v746_v53 = vpop.f32.mrb[8].mxu0 }
 0x1ff   : > { %v632_v50 = vadd.f32 %v631_v47, %v624_v8  ;;  %v627_v51 = vadd.f32 %v626_v49, %v574_v44  ;;  %v1011_v52 = vpop.f32.mrb[7].mxu1  ;;  %v1016_v54 = vpop.f32.mrb[9].mxu0 }
 0x200   : > { %v749_v56 = vpop.f32.mrb[10].mxu0 }
 0x201   : > { %635 = vst.msk [vmem:[%s300_s21] sm:$0xff] %vm634_vm5, %v632_v50  ;;  %v633_v55 = vadd.f32 %v631_v47, %v627_v51  ;;  %v1017_v57 = vpop.f32.mrb[11].mxu0 }
 0x203   : > { %636 = vst.msk [vmem:[%s300_s21 + $0x8] sm:$0xff] %vm634_vm5, %v633_v55 }
 0x204   : > { %v798_v58 = vpop.f32.mrb[8].mxu1 }
 0x205   : > { %v799_v60 = vadd.f32 %v798_v58, %v746_v53  ;;  %v1022_v61 = vpop.f32.mrb[9].mxu1 }
 0x206   : > { %v801_v62 = vpop.f32.mrb[10].mxu1 }
 0x207   : > { %v807_v63 = vadd.f32 %v806_v59, %v799_v60  ;;  %v802_v0 = vadd.f32 %v801_v62, %v749_v56  ;;  %v1023_v1 = vpop.f32.mrb[11].mxu1 }
 0x209   : > { %964 = vst.msk [vmem:[%s300_s21 + $0x10] sm:$0xff] %vm634_vm5, %v807_v63  ;;  %v808_v2 = vadd.f32 %v806_v59, %v802_v0 }
 0x20b   : > { %965 = vst.msk [vmem:[%s300_s21 + $0x18] sm:$0xff] %vm634_vm5, %v808_v2 }
 0x20c   : > { %1116 = shalt.err (!%p1113_p2)
}
 0x20d   : > { %s1117_s17 = scalar_lea.hbm %s1418_s9, 512  ;;  %s1121_s3 = scalar_lea.hbm %s1474_s7, 1024 }
 0x20e   : > { %p1118_p3 = scmp.ne.s32.totalorder %s1418_s9, %s1117_s17  ;;  %p1122_p8 = scmp.lt.u32.totalorder %s1418_s9, %s1474_s7 }
 0x20f   : > { %p1123_p9 = scmp.lt.u32.totalorder %s1121_s3, %s1117_s17  ;;  %p1125_p11 = scmp.lt.u32.totalorder %s1117_s17, %s1418_s9 }
 0x210   : > { %p1119_p4 = pnand %p1118_p3, %p1255_p5 }
 0x211   : > { %p1124_p10 = por %p1123_p9, %p1122_p8 }
 0x212   : > { %p1120_p7 = pneg %p1119_p4 }
 0x213   : > { %p1126_p12 = por %p1125_p11, %p1124_p10 }
 0x215   : > { %p1127_p13 = pnand %p1126_p12, %p1120_p7 }
 0x217   : > { %1130 = shalt.err (!%p1127_p13)
}
 0x218   : > { %s1175_s26 = smov 128   ;;  %s1176_s30 = smov 8  }
 0x219   : > { %1030 = dma.vmem_to_hbm [thread:$0]  (%p1255_p5), %s1420_s22, 512, %s1418_s9, %s1426_s28, %s1175_s26, %s1175_s26, %s1176_s30  }
 0x21a PF: > { %p1042_p0 = scmp.ge.s32.totalorder %s1169_s27, 2  ;;  %s841_s12 = sand.u32 1, %s1157_s24  }
 0x21b   : > { %s842_s18 = scalar_lea.sflag [#allocation3], %s841_s12 }
 0x21c   : > { %p1037_p1 = pnand %p1042_p0, %p1259_p6 }
 0x21e   : > { %1152 = dma.done.wait (!%p1037_p1), %s842_s18, 512  }
 0x21f   : > { %1154 = vsyncadd (!%p1037_p1), %s842_s18, 4294966784  ;;  %s1497_s27 = sld [smem:[#allocation9_spill]]  ;;  %s1498_s19 = sld [smem:[#allocation8_spill]] }
 0x220   : > { %s1499_s26 = sld [smem:[#allocation10_spill]]  ;;  %s1500_s24 = smov %s1161_s25 }
 0x225   : > { %p18_p2 = scmp.ge.s32.totalorder %s1497_s27, 4   ;;  %s1501_s25 = smov %s1498_s19 }
 0x227   :  { %20 = sbr.rel (!%p18_p2) target bundleno = 10 (0xa), region = 92 }
 0x22e   :  { %847 = vsyncpa [#allocation3], 1 }
 0x22f   :  { %849 = vsyncpa [#allocation3 + $0x1], 1 }
 0x230   :  { %850 = vsyncpa [#allocation4], 1 }
 0x231   :  { %852 = vsyncpa [#allocation4 + $0x1], 1 }

</bundles_post_ra>
